<compile_context>
chip_gen: v7x
topology: tpu7x:2x2x1
jax: 0.10.0
libtpu: 0.0.40
codegen_flags: <defaults>
</compile_context>

<pallas_src>
import math
from functools import partial

import jax
import jax.numpy as jnp
from jax.experimental import pallas as pl
from jax.experimental.pallas import tpu as pltpu


def _layer_norm(x, w, b, eps=1e-5):
    # f32 throughout (mean/var accuracy + residual-path parity with torch).
    mu = jnp.mean(x, axis=-1, keepdims=True)
    var = jnp.mean((x - mu) ** 2, axis=-1, keepdims=True)
    return (x - mu) * jax.lax.rsqrt(var + eps) * w + b


def _gelu_exact(x):
    # exact (erf-based) GELU, matching torch.nn.functional.gelu default.
    return 0.5 * x * (1.0 + jax.lax.erf(x * jnp.float32(1.0 / math.sqrt(2.0))))


def encoder_layer_kernel(x_ref,
                         ln1w_ref, ln1b_ref,
                         qkvw_ref, qkvb_ref,
                         ow_ref, ob_ref,
                         ln2w_ref, ln2b_ref,
                         w1_ref, b1_ref,
                         w2_ref, b2_ref,
                         o_ref, *, num_heads):
    x = x_ref[0]                                  # (S, D) f32
    S, D = x.shape
    H = num_heads
    hd = D // H

    # ---------------- self-attention block (pre-norm) ----------------
    # softmax scale is already folded into W_q / b_q on the host.
    xn = _layer_norm(x, ln1w_ref[...], ln1b_ref[...])                  # f32
    qkv = jnp.dot(xn.astype(jnp.bfloat16), qkvw_ref[...],
                  preferred_element_type=jnp.float32) + qkvb_ref[...]  # (S, 3D) f32

    attn = jnp.zeros((S, D), jnp.float32)
    for h in range(H):   # static unrolled; per-head temporaries consumed each iter
        lo = h * hd
        qh = qkv[:, lo:lo + hd].astype(jnp.bfloat16)                   # (S, hd)
        kh = qkv[:, D + lo:D + lo + hd].astype(jnp.bfloat16)
        vh = qkv[:, 2 * D + lo:2 * D + lo + hd].astype(jnp.bfloat16)

        s = jnp.einsum('qd,kd->qk', qh, kh,
                       preferred_element_type=jnp.float32)             # (S, S) f32
        s = s - jnp.max(s, axis=-1, keepdims=True)
        p = jnp.exp(s)
        p = p * pl.reciprocal(jnp.sum(p, axis=-1, keepdims=True), approx=True)

        ctx = jnp.dot(p.astype(jnp.bfloat16), vh,
                      preferred_element_type=jnp.float32)              # (S, hd)
        # accumulate out-projection per head: no concat, single f32 accumulator
        attn += jnp.dot(ctx.astype(jnp.bfloat16), ow_ref[lo:lo + hd, :],
                        preferred_element_type=jnp.float32)            # (S, D)

    x1 = x + attn + ob_ref[...]                   # residual 1 (f32)

    # ---------------- feed-forward block (pre-norm) -------------------
    x2n = _layer_norm(x1, ln2w_ref[...], ln2b_ref[...])
    h1 = jnp.dot(x2n.astype(jnp.bfloat16), w1_ref[...],
                 preferred_element_type=jnp.float32) + b1_ref[...]     # (S, Dff)
    h1 = _gelu_exact(h1)                          # exact erf for torch parity
    ff = jnp.dot(h1.astype(jnp.bfloat16), w2_ref[...],
                 preferred_element_type=jnp.float32) + b2_ref[...]     # (S, D)
    o_ref[0] = x1 + ff                            # residual 2 (f32)


def nn_block_forward(x, params, num_heads):
    """x: (B, S, D) float32 (batch_first). Grid iterates over batch; all
    weights (pre-transposed, bf16) stay VMEM-resident across grid steps."""
    B, S, D = x.shape
    Dff = params["fc1_w"].shape[0]
    hd = D // num_heads
    scale = 1.0 / math.sqrt(hd)

    # ---- host-side (one-time) weight preprocessing -----------------------
    # pre-transpose to (in, out) so the kernel computes x @ W directly, fold
    # the softmax scale into the q columns, cast matmul weights to bf16,
    # keep biases / LN params in f32 as lane-major (1, N) arrays.
    col_scale = jnp.concatenate(
        [jnp.full((D,), scale, jnp.float32), jnp.ones((2 * D,), jnp.float32)])
    qkv_wt = (params["qkv_w"].T.astype(jnp.float32) * col_scale[None, :]
              ).astype(jnp.bfloat16)                                   # (D, 3D)
    qkv_b = (params["qkv_b"].astype(jnp.float32) * col_scale).reshape(1, 3 * D)
    out_wt = params["out_w"].T.astype(jnp.bfloat16)                    # (D, D)
    out_b = params["out_b"].astype(jnp.float32).reshape(1, D)
    fc1_wt = params["fc1_w"].T.astype(jnp.bfloat16)                    # (D, Dff)
    fc1_b = params["fc1_b"].astype(jnp.float32).reshape(1, Dff)
    fc2_wt = params["fc2_w"].T.astype(jnp.bfloat16)                    # (Dff, D)
    fc2_b = params["fc2_b"].astype(jnp.float32).reshape(1, D)
    ln1_w = params["ln1_w"].astype(jnp.float32).reshape(1, D)
    ln1_b = params["ln1_b"].astype(jnp.float32).reshape(1, D)
    ln2_w = params["ln2_w"].astype(jnp.float32).reshape(1, D)
    ln2_b = params["ln2_b"].astype(jnp.float32).reshape(1, D)

    # ---- explicit scoped-VMEM budget --------------------------------------
    w_bytes = 2 * (D * 3 * D + D * D + D * Dff + Dff * D)     # bf16 weights
    w_bytes += 4 * (3 * D + Dff + 6 * D)                      # f32 biases / LN
    act_bytes = 2 * 2 * S * D * 4                             # in/out tiles, 2-buf
    inter_bytes = 4 * (S * 3 * D + S * Dff + 2 * S * S + 2 * S * D)
    vmem_limit = int(min(max(2 * (2 * w_bytes + act_bytes + inter_bytes),
                             32 * 1024 * 1024), 64 * 1024 * 1024))

    def mat_spec(shape):
        return pl.BlockSpec(shape, lambda b: (0, 0))

    kernel = partial(encoder_layer_kernel, num_heads=num_heads)

    return pl.pallas_call(
        kernel,
        out_shape=jax.ShapeDtypeStruct((B, S, D), jnp.float32),
        grid_spec=pltpu.PrefetchScalarGridSpec(
            num_scalar_prefetch=0,
            grid=(B,),
            in_specs=[
                pl.BlockSpec((1, S, D), lambda b: (b, 0, 0)),   # x
                mat_spec((1, D)), mat_spec((1, D)),             # ln1 w, b
                mat_spec((D, 3 * D)), mat_spec((1, 3 * D)),     # in_proj W^T, b
                mat_spec((D, D)), mat_spec((1, D)),             # out_proj W^T, b
                mat_spec((1, D)), mat_spec((1, D)),             # ln2 w, b
                mat_spec((D, Dff)), mat_spec((1, Dff)),         # fc1 W^T, b
                mat_spec((Dff, D)), mat_spec((1, D)),           # fc2 W^T, b
            ],
            out_specs=pl.BlockSpec((1, S, D), lambda b: (b, 0, 0)),
        ),
        compiler_params=pltpu.CompilerParams(
            dimension_semantics=("parallel",),
            vmem_limit_bytes=vmem_limit),
    )(x.astype(jnp.float32),
      ln1_w, ln1_b,
      qkv_wt, qkv_b,
      out_wt, out_b,
      ln2_w, ln2_b,
      fc1_wt, fc1_b,
      fc2_wt, fc2_b)


def reference_forward(x, p, num_heads):
    """Pure-JAX f32 reference (mirror of nn.TransformerEncoderLayer, norm_first)."""
    B, S, D = x.shape
    hd = D // num_heads

    def ln(v, w, b):
        mu = jnp.mean(v, -1, keepdims=True)
        var = jnp.mean((v - mu) ** 2, -1, keepdims=True)
        return (v - mu) / jnp.sqrt(var + 1e-5) * w + b

    xn = ln(x, p["ln1_w"], p["ln1_b"])
    qkv = xn @ p["qkv_w"].T + p["qkv_b"]
    q, k, v = jnp.split(qkv, 3, axis=-1)
    q = q.reshape(B, S, num_heads, hd).transpose(0, 2, 1, 3)
    k = k.reshape(B, S, num_heads, hd).transpose(0, 2, 1, 3)
    v = v.reshape(B, S, num_heads, hd).transpose(0, 2, 1, 3)
    s = jnp.einsum("bhqd,bhkd->bhqk", q, k) / math.sqrt(hd)
    a = jax.nn.softmax(s, axis=-1)
    o = jnp.einsum("bhqk,bhkd->bhqd", a, v).transpose(0, 2, 1, 3).reshape(B, S, D)
    x1 = x + (o @ p["out_w"].T + p["out_b"])
    x2n = ln(x1, p["ln2_w"], p["ln2_b"])
    h = jax.nn.gelu(x2n @ p["fc1_w"].T + p["fc1_b"], approximate=False)
    return x1 + (h @ p["fc2_w"].T + p["fc2_b"])


def init_params(key, dim, num_heads, mlp_ratio):
    dff = int(mlp_ratio * dim)
    ks = jax.random.split(key, 8)
    s = 0.02
    return {
        "ln1_w": jnp.ones((dim,), jnp.float32),
        "ln1_b": jnp.zeros((dim,), jnp.float32),
        "qkv_w": s * jax.random.normal(ks[0], (3 * dim, dim), jnp.float32),
        "qkv_b": s * jax.random.normal(ks[1], (3 * dim,), jnp.float32),
        "out_w": s * jax.random.normal(ks[2], (dim, dim), jnp.float32),
        "out_b": s * jax.random.normal(ks[3], (dim,), jnp.float32),
        "ln2_w": jnp.ones((dim,), jnp.float32),
        "ln2_b": jnp.zeros((dim,), jnp.float32),
        "fc1_w": s * jax.random.normal(ks[4], (dff, dim), jnp.float32),
        "fc1_b": s * jax.random.normal(ks[5], (dff,), jnp.float32),
        "fc2_w": s * jax.random.normal(ks[6], (dim, dff), jnp.float32),
        "fc2_b": s * jax.random.normal(ks[7], (dim,), jnp.float32),
    }


if __name__ == "__main__":
    B, S, D = 2, 8, 32
    num_heads = 4
    mlp_ratio = 4.0

    key = jax.random.PRNGKey(0)
    kx, kp = jax.random.split(key)
    x = jax.random.normal(kx, (B, S, D), jnp.float32)
    params = init_params(kp, D, num_heads, mlp_ratio)

    out = nn_block_forward(x, params, num_heads)
    out = jax.block_until_ready(out)

    ref = jax.block_until_ready(reference_forward(x, params, num_heads))
    assert out.shape == (B, S, D)
    assert jnp.allclose(out, ref, atol=2e-2, rtol=2e-2), "mismatch vs JAX reference"

    print("KERNEL_OK")
</pallas_src>

<mosaic_0001>
module attributes {stable_mosaic.version = 11 : i64} {
  func.func @encoder_layer_kernel(%arg0: i32, %arg1: memref<1x8x32xf32, #tpu.memory_space<vmem>>, %arg2: memref<1x32xf32, #tpu.memory_space<vmem>>, %arg3: memref<1x32xf32, #tpu.memory_space<vmem>>, %arg4: memref<32x96xbf16, #tpu.memory_space<vmem>>, %arg5: memref<1x96xf32, #tpu.memory_space<vmem>>, %arg6: memref<32x32xbf16, #tpu.memory_space<vmem>>, %arg7: memref<1x32xf32, #tpu.memory_space<vmem>>, %arg8: memref<1x32xf32, #tpu.memory_space<vmem>>, %arg9: memref<1x32xf32, #tpu.memory_space<vmem>>, %arg10: memref<32x128xbf16, #tpu.memory_space<vmem>>, %arg11: memref<1x128xf32, #tpu.memory_space<vmem>>, %arg12: memref<128x32xbf16, #tpu.memory_space<vmem>>, %arg13: memref<1x32xf32, #tpu.memory_space<vmem>>, %arg14: memref<1x8x32xf32, #tpu.memory_space<vmem>>) attributes {dimension_semantics = [#tpu.dimension_semantics<parallel>], iteration_bounds = array<i64: 2>, scalar_prefetch = 0 : i64, scratch_operands = 0 : i64, tpu.core_type = #tpu.core_type<tc>, window_params = [{transform_indices = @transform_0, window_bounds = array<i64: 1, 8, 32>}, {pipeline_mode = #tpu.pipeline_mode<synchronous>, transform_indices = @transform_1, window_bounds = array<i64: 1, 32>}, {pipeline_mode = #tpu.pipeline_mode<synchronous>, transform_indices = @transform_2, window_bounds = array<i64: 1, 32>}, {pipeline_mode = #tpu.pipeline_mode<synchronous>, transform_indices = @transform_3, window_bounds = array<i64: 32, 96>}, {pipeline_mode = #tpu.pipeline_mode<synchronous>, transform_indices = @transform_4, window_bounds = array<i64: 1, 96>}, {pipeline_mode = #tpu.pipeline_mode<synchronous>, transform_indices = @transform_5, window_bounds = array<i64: 32, 32>}, {pipeline_mode = #tpu.pipeline_mode<synchronous>, transform_indices = @transform_6, window_bounds = array<i64: 1, 32>}, {pipeline_mode = #tpu.pipeline_mode<synchronous>, transform_indices = @transform_7, window_bounds = array<i64: 1, 32>}, {pipeline_mode = #tpu.pipeline_mode<synchronous>, transform_indices = @transform_8, window_bounds = array<i64: 1, 32>}, {pipeline_mode = #tpu.pipeline_mode<synchronous>, transform_indices = @transform_9, window_bounds = array<i64: 32, 128>}, {pipeline_mode = #tpu.pipeline_mode<synchronous>, transform_indices = @transform_10, window_bounds = array<i64: 1, 128>}, {pipeline_mode = #tpu.pipeline_mode<synchronous>, transform_indices = @transform_11, window_bounds = array<i64: 128, 32>}, {pipeline_mode = #tpu.pipeline_mode<synchronous>, transform_indices = @transform_12, window_bounds = array<i64: 1, 32>}, {transform_indices = @transform_13, window_bounds = array<i64: 1, 8, 32>}]} {
    %c0 = arith.constant 0 : index
    %c0_0 = arith.constant 0 : index
    %c0_1 = arith.constant 0 : index
    %0 = vector.load %arg1[%c0, %c0_0, %c0_1] : memref<1x8x32xf32, #tpu.memory_space<vmem>>, vector<1x8x32xf32>
    %1 = vector.shape_cast %0 : vector<1x8x32xf32> to vector<8x32xf32>
    %c0_2 = arith.constant 0 : index
    %c0_3 = arith.constant 0 : index
    %2 = vector.load %arg2[%c0_2, %c0_3] : memref<1x32xf32, #tpu.memory_space<vmem>>, vector<1x32xf32>
    %c0_4 = arith.constant 0 : index
    %c0_5 = arith.constant 0 : index
    %3 = vector.load %arg3[%c0_4, %c0_5] : memref<1x32xf32, #tpu.memory_space<vmem>>, vector<1x32xf32>
    %cst = arith.constant dense<0.000000e+00> : vector<8xf32>
    %4 = vector.multi_reduction <add>, %1, %cst [1] : vector<8x32xf32> to vector<8xf32>
    %5 = vector.shape_cast %4 : vector<8xf32> to vector<8x1xf32>
    %cst_6 = arith.constant 3.200000e+01 : f32
    %6 = vector.broadcast %cst_6 : f32 to vector<8x1xf32>
    %7 = arith.divf %5, %6 : vector<8x1xf32>
    %8 = vector.broadcast %7 : vector<8x1xf32> to vector<8x32xf32>
    %9 = arith.subf %1, %8 : vector<8x32xf32>
    %10 = arith.mulf %9, %9 : vector<8x32xf32>
    %cst_7 = arith.constant dense<0.000000e+00> : vector<8xf32>
    %11 = vector.multi_reduction <add>, %10, %cst_7 [1] : vector<8x32xf32> to vector<8xf32>
    %12 = vector.shape_cast %11 : vector<8xf32> to vector<8x1xf32>
    %cst_8 = arith.constant 3.200000e+01 : f32
    %13 = vector.broadcast %cst_8 : f32 to vector<8x1xf32>
    %14 = arith.divf %12, %13 : vector<8x1xf32>
    %15 = vector.broadcast %7 : vector<8x1xf32> to vector<8x32xf32>
    %16 = arith.subf %1, %15 : vector<8x32xf32>
    %cst_9 = arith.constant 9.99999974E-6 : f32
    %17 = vector.broadcast %cst_9 : f32 to vector<8x1xf32>
    %18 = arith.addf %14, %17 : vector<8x1xf32>
    %19 = math.rsqrt %18 : vector<8x1xf32>
    %20 = vector.broadcast %19 : vector<8x1xf32> to vector<8x32xf32>
    %21 = arith.mulf %16, %20 : vector<8x32xf32>
    %22 = vector.broadcast %2 : vector<1x32xf32> to vector<8x32xf32>
    %23 = arith.mulf %21, %22 : vector<8x32xf32>
    %24 = vector.broadcast %3 : vector<1x32xf32> to vector<8x32xf32>
    %25 = arith.addf %23, %24 : vector<8x32xf32>
    %26 = arith.truncf %25 : vector<8x32xf32> to vector<8x32xbf16>
    %c0_10 = arith.constant 0 : index
    %c0_11 = arith.constant 0 : index
    %27 = vector.load %arg4[%c0_10, %c0_11] : memref<32x96xbf16, #tpu.memory_space<vmem>>, vector<32x96xbf16>
    %cst_12 = arith.constant dense<0.000000e+00> : vector<8x96xf32>
    %28 = tpu.matmul %26, %27, %cst_12 {dimension_numbers = #tpu.dot_dimension_numbers<[1], [0], [0], [1], [0, 0, 1, 1], [], []>} : vector<8x32xbf16>, vector<32x96xbf16>, vector<8x96xf32> -> vector<8x96xf32>
    %c0_13 = arith.constant 0 : index
    %c0_14 = arith.constant 0 : index
    %29 = vector.load %arg5[%c0_13, %c0_14] : memref<1x96xf32, #tpu.memory_space<vmem>>, vector<1x96xf32>
    %30 = vector.broadcast %29 : vector<1x96xf32> to vector<8x96xf32>
    %31 = arith.addf %28, %30 : vector<8x96xf32>
    %cst_15 = arith.constant 0.000000e+00 : f32
    %32 = vector.broadcast %cst_15 : f32 to vector<8x32xf32>
    %33 = vector.extract_strided_slice %31 {offsets = [0, 0], sizes = [8, 8], strides = [1, 1]} : vector<8x96xf32> to vector<8x8xf32>
    %34 = arith.truncf %33 : vector<8x8xf32> to vector<8x8xbf16>
    %35 = vector.extract_strided_slice %31 {offsets = [0, 32], sizes = [8, 8], strides = [1, 1]} : vector<8x96xf32> to vector<8x8xf32>
    %36 = arith.truncf %35 : vector<8x8xf32> to vector<8x8xbf16>
    %37 = vector.extract_strided_slice %31 {offsets = [0, 64], sizes = [8, 8], strides = [1, 1]} : vector<8x96xf32> to vector<8x8xf32>
    %38 = arith.truncf %37 : vector<8x8xf32> to vector<8x8xbf16>
    "tpu.trace_start"() <{level = 10 : i32, message = "qd,kd->qk"}> : () -> ()
    %cst_16 = arith.constant dense<0.000000e+00> : vector<8x8xf32>
    %39 = tpu.matmul %34, %36, %cst_16 {dimension_numbers = #tpu.dot_dimension_numbers<[1], [1], [0], [0], [0, 0, 1, 0], [], []>} : vector<8x8xbf16>, vector<8x8xbf16>, vector<8x8xf32> -> vector<8x8xf32>
    "tpu.trace_stop"() : () -> ()
    %cst_17 = arith.constant dense<0xFF800000> : vector<8xf32>
    %40 = vector.multi_reduction <maximumf>, %39, %cst_17 [1] : vector<8x8xf32> to vector<8xf32>
    %41 = vector.shape_cast %40 : vector<8xf32> to vector<8x1xf32>
    %42 = vector.broadcast %41 : vector<8x1xf32> to vector<8x8xf32>
    %43 = arith.subf %39, %42 : vector<8x8xf32>
    %44 = math.exp %43 : vector<8x8xf32>
    %cst_18 = arith.constant dense<0.000000e+00> : vector<8xf32>
    %45 = vector.multi_reduction <add>, %44, %cst_18 [1] : vector<8x8xf32> to vector<8xf32>
    %46 = vector.shape_cast %45 : vector<8xf32> to vector<8x1xf32>
    %47 = tpu.reciprocal %46 {approx = true} : vector<8x1xf32> -> vector<8x1xf32>
    %48 = vector.broadcast %47 : vector<8x1xf32> to vector<8x8xf32>
    %49 = arith.mulf %44, %48 : vector<8x8xf32>
    %50 = arith.truncf %49 : vector<8x8xf32> to vector<8x8xbf16>
    %cst_19 = arith.constant dense<0.000000e+00> : vector<8x8xf32>
    %51 = tpu.matmul %50, %38, %cst_19 {dimension_numbers = #tpu.dot_dimension_numbers<[1], [0], [0], [1], [0, 0, 1, 1], [], []>} : vector<8x8xbf16>, vector<8x8xbf16>, vector<8x8xf32> -> vector<8x8xf32>
    %52 = arith.truncf %51 : vector<8x8xf32> to vector<8x8xbf16>
    %c0_20 = arith.constant 0 : index
    %c0_21 = arith.constant 0 : index
    %53 = vector.load %arg6[%c0_20, %c0_21] : memref<32x32xbf16, #tpu.memory_space<vmem>>, vector<8x32xbf16>
    %cst_22 = arith.constant dense<0.000000e+00> : vector<8x32xf32>
    %54 = tpu.matmul %52, %53, %cst_22 {dimension_numbers = #tpu.dot_dimension_numbers<[1], [0], [0], [1], [0, 0, 1, 1], [], []>} : vector<8x8xbf16>, vector<8x32xbf16>, vector<8x32xf32> -> vector<8x32xf32>
    %55 = arith.addf %32, %54 : vector<8x32xf32>
    %56 = vector.extract_strided_slice %31 {offsets = [0, 8], sizes = [8, 8], strides = [1, 1]} : vector<8x96xf32> to vector<8x8xf32>
    %57 = arith.truncf %56 : vector<8x8xf32> to vector<8x8xbf16>
    %58 = vector.extract_strided_slice %31 {offsets = [0, 40], sizes = [8, 8], strides = [1, 1]} : vector<8x96xf32> to vector<8x8xf32>
    %59 = arith.truncf %58 : vector<8x8xf32> to vector<8x8xbf16>
    %60 = vector.extract_strided_slice %31 {offsets = [0, 72], sizes = [8, 8], strides = [1, 1]} : vector<8x96xf32> to vector<8x8xf32>
    %61 = arith.truncf %60 : vector<8x8xf32> to vector<8x8xbf16>
    "tpu.trace_start"() <{level = 10 : i32, message = "qd,kd->qk"}> : () -> ()
    %cst_23 = arith.constant dense<0.000000e+00> : vector<8x8xf32>
    %62 = tpu.matmul %57, %59, %cst_23 {dimension_numbers = #tpu.dot_dimension_numbers<[1], [1], [0], [0], [0, 0, 1, 0], [], []>} : vector<8x8xbf16>, vector<8x8xbf16>, vector<8x8xf32> -> vector<8x8xf32>
    "tpu.trace_stop"() : () -> ()
    %cst_24 = arith.constant dense<0xFF800000> : vector<8xf32>
    %63 = vector.multi_reduction <maximumf>, %62, %cst_24 [1] : vector<8x8xf32> to vector<8xf32>
    %64 = vector.shape_cast %63 : vector<8xf32> to vector<8x1xf32>
    %65 = vector.broadcast %64 : vector<8x1xf32> to vector<8x8xf32>
    %66 = arith.subf %62, %65 : vector<8x8xf32>
    %67 = math.exp %66 : vector<8x8xf32>
    %cst_25 = arith.constant dense<0.000000e+00> : vector<8xf32>
    %68 = vector.multi_reduction <add>, %67, %cst_25 [1] : vector<8x8xf32> to vector<8xf32>
    %69 = vector.shape_cast %68 : vector<8xf32> to vector<8x1xf32>
    %70 = tpu.reciprocal %69 {approx = true} : vector<8x1xf32> -> vector<8x1xf32>
    %71 = vector.broadcast %70 : vector<8x1xf32> to vector<8x8xf32>
    %72 = arith.mulf %67, %71 : vector<8x8xf32>
    %73 = arith.truncf %72 : vector<8x8xf32> to vector<8x8xbf16>
    %cst_26 = arith.constant dense<0.000000e+00> : vector<8x8xf32>
    %74 = tpu.matmul %73, %61, %cst_26 {dimension_numbers = #tpu.dot_dimension_numbers<[1], [0], [0], [1], [0, 0, 1, 1], [], []>} : vector<8x8xbf16>, vector<8x8xbf16>, vector<8x8xf32> -> vector<8x8xf32>
    %75 = arith.truncf %74 : vector<8x8xf32> to vector<8x8xbf16>
    %c8 = arith.constant 8 : index
    %c0_27 = arith.constant 0 : index
    %76 = vector.load %arg6[%c8, %c0_27] : memref<32x32xbf16, #tpu.memory_space<vmem>>, vector<8x32xbf16>
    %cst_28 = arith.constant dense<0.000000e+00> : vector<8x32xf32>
    %77 = tpu.matmul %75, %76, %cst_28 {dimension_numbers = #tpu.dot_dimension_numbers<[1], [0], [0], [1], [0, 0, 1, 1], [], []>} : vector<8x8xbf16>, vector<8x32xbf16>, vector<8x32xf32> -> vector<8x32xf32>
    %78 = arith.addf %55, %77 : vector<8x32xf32>
    %79 = vector.extract_strided_slice %31 {offsets = [0, 16], sizes = [8, 8], strides = [1, 1]} : vector<8x96xf32> to vector<8x8xf32>
    %80 = arith.truncf %79 : vector<8x8xf32> to vector<8x8xbf16>
    %81 = vector.extract_strided_slice %31 {offsets = [0, 48], sizes = [8, 8], strides = [1, 1]} : vector<8x96xf32> to vector<8x8xf32>
    %82 = arith.truncf %81 : vector<8x8xf32> to vector<8x8xbf16>
    %83 = vector.extract_strided_slice %31 {offsets = [0, 80], sizes = [8, 8], strides = [1, 1]} : vector<8x96xf32> to vector<8x8xf32>
    %84 = arith.truncf %83 : vector<8x8xf32> to vector<8x8xbf16>
    "tpu.trace_start"() <{level = 10 : i32, message = "qd,kd->qk"}> : () -> ()
    %cst_29 = arith.constant dense<0.000000e+00> : vector<8x8xf32>
    %85 = tpu.matmul %80, %82, %cst_29 {dimension_numbers = #tpu.dot_dimension_numbers<[1], [1], [0], [0], [0, 0, 1, 0], [], []>} : vector<8x8xbf16>, vector<8x8xbf16>, vector<8x8xf32> -> vector<8x8xf32>
    "tpu.trace_stop"() : () -> ()
    %cst_30 = arith.constant dense<0xFF800000> : vector<8xf32>
    %86 = vector.multi_reduction <maximumf>, %85, %cst_30 [1] : vector<8x8xf32> to vector<8xf32>
    %87 = vector.shape_cast %86 : vector<8xf32> to vector<8x1xf32>
    %88 = vector.broadcast %87 : vector<8x1xf32> to vector<8x8xf32>
    %89 = arith.subf %85, %88 : vector<8x8xf32>
    %90 = math.exp %89 : vector<8x8xf32>
    %cst_31 = arith.constant dense<0.000000e+00> : vector<8xf32>
    %91 = vector.multi_reduction <add>, %90, %cst_31 [1] : vector<8x8xf32> to vector<8xf32>
    %92 = vector.shape_cast %91 : vector<8xf32> to vector<8x1xf32>
    %93 = tpu.reciprocal %92 {approx = true} : vector<8x1xf32> -> vector<8x1xf32>
    %94 = vector.broadcast %93 : vector<8x1xf32> to vector<8x8xf32>
    %95 = arith.mulf %90, %94 : vector<8x8xf32>
    %96 = arith.truncf %95 : vector<8x8xf32> to vector<8x8xbf16>
    %cst_32 = arith.constant dense<0.000000e+00> : vector<8x8xf32>
    %97 = tpu.matmul %96, %84, %cst_32 {dimension_numbers = #tpu.dot_dimension_numbers<[1], [0], [0], [1], [0, 0, 1, 1], [], []>} : vector<8x8xbf16>, vector<8x8xbf16>, vector<8x8xf32> -> vector<8x8xf32>
    %98 = arith.truncf %97 : vector<8x8xf32> to vector<8x8xbf16>
    %c16 = arith.constant 16 : index
    %c0_33 = arith.constant 0 : index
    %99 = vector.load %arg6[%c16, %c0_33] : memref<32x32xbf16, #tpu.memory_space<vmem>>, vector<8x32xbf16>
    %cst_34 = arith.constant dense<0.000000e+00> : vector<8x32xf32>
    %100 = tpu.matmul %98, %99, %cst_34 {dimension_numbers = #tpu.dot_dimension_numbers<[1], [0], [0], [1], [0, 0, 1, 1], [], []>} : vector<8x8xbf16>, vector<8x32xbf16>, vector<8x32xf32> -> vector<8x32xf32>
    %101 = arith.addf %78, %100 : vector<8x32xf32>
    %102 = vector.extract_strided_slice %31 {offsets = [0, 24], sizes = [8, 8], strides = [1, 1]} : vector<8x96xf32> to vector<8x8xf32>
    %103 = arith.truncf %102 : vector<8x8xf32> to vector<8x8xbf16>
    %104 = vector.extract_strided_slice %31 {offsets = [0, 56], sizes = [8, 8], strides = [1, 1]} : vector<8x96xf32> to vector<8x8xf32>
    %105 = arith.truncf %104 : vector<8x8xf32> to vector<8x8xbf16>
    %106 = vector.extract_strided_slice %31 {offsets = [0, 88], sizes = [8, 8], strides = [1, 1]} : vector<8x96xf32> to vector<8x8xf32>
    %107 = arith.truncf %106 : vector<8x8xf32> to vector<8x8xbf16>
    "tpu.trace_start"() <{level = 10 : i32, message = "qd,kd->qk"}> : () -> ()
    %cst_35 = arith.constant dense<0.000000e+00> : vector<8x8xf32>
    %108 = tpu.matmul %103, %105, %cst_35 {dimension_numbers = #tpu.dot_dimension_numbers<[1], [1], [0], [0], [0, 0, 1, 0], [], []>} : vector<8x8xbf16>, vector<8x8xbf16>, vector<8x8xf32> -> vector<8x8xf32>
    "tpu.trace_stop"() : () -> ()
    %cst_36 = arith.constant dense<0xFF800000> : vector<8xf32>
    %109 = vector.multi_reduction <maximumf>, %108, %cst_36 [1] : vector<8x8xf32> to vector<8xf32>
    %110 = vector.shape_cast %109 : vector<8xf32> to vector<8x1xf32>
    %111 = vector.broadcast %110 : vector<8x1xf32> to vector<8x8xf32>
    %112 = arith.subf %108, %111 : vector<8x8xf32>
    %113 = math.exp %112 : vector<8x8xf32>
    %cst_37 = arith.constant dense<0.000000e+00> : vector<8xf32>
    %114 = vector.multi_reduction <add>, %113, %cst_37 [1] : vector<8x8xf32> to vector<8xf32>
    %115 = vector.shape_cast %114 : vector<8xf32> to vector<8x1xf32>
    %116 = tpu.reciprocal %115 {approx = true} : vector<8x1xf32> -> vector<8x1xf32>
    %117 = vector.broadcast %116 : vector<8x1xf32> to vector<8x8xf32>
    %118 = arith.mulf %113, %117 : vector<8x8xf32>
    %119 = arith.truncf %118 : vector<8x8xf32> to vector<8x8xbf16>
    %cst_38 = arith.constant dense<0.000000e+00> : vector<8x8xf32>
    %120 = tpu.matmul %119, %107, %cst_38 {dimension_numbers = #tpu.dot_dimension_numbers<[1], [0], [0], [1], [0, 0, 1, 1], [], []>} : vector<8x8xbf16>, vector<8x8xbf16>, vector<8x8xf32> -> vector<8x8xf32>
    %121 = arith.truncf %120 : vector<8x8xf32> to vector<8x8xbf16>
    %c24 = arith.constant 24 : index
    %c0_39 = arith.constant 0 : index
    %122 = vector.load %arg6[%c24, %c0_39] : memref<32x32xbf16, #tpu.memory_space<vmem>>, vector<8x32xbf16>
    %cst_40 = arith.constant dense<0.000000e+00> : vector<8x32xf32>
    %123 = tpu.matmul %121, %122, %cst_40 {dimension_numbers = #tpu.dot_dimension_numbers<[1], [0], [0], [1], [0, 0, 1, 1], [], []>} : vector<8x8xbf16>, vector<8x32xbf16>, vector<8x32xf32> -> vector<8x32xf32>
    %124 = arith.addf %101, %123 : vector<8x32xf32>
    %125 = arith.addf %1, %124 : vector<8x32xf32>
    %c0_41 = arith.constant 0 : index
    %c0_42 = arith.constant 0 : index
    %126 = vector.load %arg7[%c0_41, %c0_42] : memref<1x32xf32, #tpu.memory_space<vmem>>, vector<1x32xf32>
    %127 = vector.broadcast %126 : vector<1x32xf32> to vector<8x32xf32>
    %128 = arith.addf %125, %127 : vector<8x32xf32>
    %c0_43 = arith.constant 0 : index
    %c0_44 = arith.constant 0 : index
    %129 = vector.load %arg8[%c0_43, %c0_44] : memref<1x32xf32, #tpu.memory_space<vmem>>, vector<1x32xf32>
    %c0_45 = arith.constant 0 : index
    %c0_46 = arith.constant 0 : index
    %130 = vector.load %arg9[%c0_45, %c0_46] : memref<1x32xf32, #tpu.memory_space<vmem>>, vector<1x32xf32>
    %cst_47 = arith.constant dense<0.000000e+00> : vector<8xf32>
    %131 = vector.multi_reduction <add>, %128, %cst_47 [1] : vector<8x32xf32> to vector<8xf32>
    %132 = vector.shape_cast %131 : vector<8xf32> to vector<8x1xf32>
    %cst_48 = arith.constant 3.200000e+01 : f32
    %133 = vector.broadcast %cst_48 : f32 to vector<8x1xf32>
    %134 = arith.divf %132, %133 : vector<8x1xf32>
    %135 = vector.broadcast %134 : vector<8x1xf32> to vector<8x32xf32>
    %136 = arith.subf %128, %135 : vector<8x32xf32>
    %137 = arith.mulf %136, %136 : vector<8x32xf32>
    %cst_49 = arith.constant dense<0.000000e+00> : vector<8xf32>
    %138 = vector.multi_reduction <add>, %137, %cst_49 [1] : vector<8x32xf32> to vector<8xf32>
    %139 = vector.shape_cast %138 : vector<8xf32> to vector<8x1xf32>
    %cst_50 = arith.constant 3.200000e+01 : f32
    %140 = vector.broadcast %cst_50 : f32 to vector<8x1xf32>
    %141 = arith.divf %139, %140 : vector<8x1xf32>
    %142 = vector.broadcast %134 : vector<8x1xf32> to vector<8x32xf32>
    %143 = arith.subf %128, %142 : vector<8x32xf32>
    %cst_51 = arith.constant 9.99999974E-6 : f32
    %144 = vector.broadcast %cst_51 : f32 to vector<8x1xf32>
    %145 = arith.addf %141, %144 : vector<8x1xf32>
    %146 = math.rsqrt %145 : vector<8x1xf32>
    %147 = vector.broadcast %146 : vector<8x1xf32> to vector<8x32xf32>
    %148 = arith.mulf %143, %147 : vector<8x32xf32>
    %149 = vector.broadcast %129 : vector<1x32xf32> to vector<8x32xf32>
    %150 = arith.mulf %148, %149 : vector<8x32xf32>
    %151 = vector.broadcast %130 : vector<1x32xf32> to vector<8x32xf32>
    %152 = arith.addf %150, %151 : vector<8x32xf32>
    %153 = arith.truncf %152 : vector<8x32xf32> to vector<8x32xbf16>
    %c0_52 = arith.constant 0 : index
    %c0_53 = arith.constant 0 : index
    %154 = vector.load %arg10[%c0_52, %c0_53] : memref<32x128xbf16, #tpu.memory_space<vmem>>, vector<32x128xbf16>
    %cst_54 = arith.constant dense<0.000000e+00> : vector<8x128xf32>
    %155 = tpu.matmul %153, %154, %cst_54 {dimension_numbers = #tpu.dot_dimension_numbers<[1], [0], [0], [1], [0, 0, 1, 1], [], []>} : vector<8x32xbf16>, vector<32x128xbf16>, vector<8x128xf32> -> vector<8x128xf32>
    %c0_55 = arith.constant 0 : index
    %c0_56 = arith.constant 0 : index
    %156 = vector.load %arg11[%c0_55, %c0_56] : memref<1x128xf32, #tpu.memory_space<vmem>>, vector<1x128xf32>
    %157 = vector.broadcast %156 : vector<1x128xf32> to vector<8x128xf32>
    %158 = arith.addf %155, %157 : vector<8x128xf32>
    %cst_57 = arith.constant 5.000000e-01 : f32
    %159 = vector.broadcast %cst_57 : f32 to vector<8x128xf32>
    %160 = arith.mulf %159, %158 : vector<8x128xf32>
    %cst_58 = arith.constant 0.707106769 : f32
    %161 = vector.broadcast %cst_58 : f32 to vector<8x128xf32>
    %162 = arith.mulf %158, %161 : vector<8x128xf32>
    %163 = math.erf %162 : vector<8x128xf32>
    %cst_59 = arith.constant 1.000000e+00 : f32
    %164 = vector.broadcast %cst_59 : f32 to vector<8x128xf32>
    %165 = arith.addf %164, %163 : vector<8x128xf32>
    %166 = arith.mulf %160, %165 : vector<8x128xf32>
    %167 = arith.truncf %166 : vector<8x128xf32> to vector<8x128xbf16>
    %c0_60 = arith.constant 0 : index
    %c0_61 = arith.constant 0 : index
    %168 = vector.load %arg12[%c0_60, %c0_61] : memref<128x32xbf16, #tpu.memory_space<vmem>>, vector<128x32xbf16>
    %cst_62 = arith.constant dense<0.000000e+00> : vector<8x32xf32>
    %169 = tpu.matmul %167, %168, %cst_62 {dimension_numbers = #tpu.dot_dimension_numbers<[1], [0], [0], [1], [0, 0, 1, 1], [], []>} : vector<8x128xbf16>, vector<128x32xbf16>, vector<8x32xf32> -> vector<8x32xf32>
    %c0_63 = arith.constant 0 : index
    %c0_64 = arith.constant 0 : index
    %170 = vector.load %arg13[%c0_63, %c0_64] : memref<1x32xf32, #tpu.memory_space<vmem>>, vector<1x32xf32>
    %171 = vector.broadcast %170 : vector<1x32xf32> to vector<8x32xf32>
    %172 = arith.addf %169, %171 : vector<8x32xf32>
    %173 = arith.addf %128, %172 : vector<8x32xf32>
    %c0_65 = arith.constant 0 : index
    %c0_66 = arith.constant 0 : index
    %c0_67 = arith.constant 0 : index
    %174 = vector.load %arg14[%c0_65, %c0_66, %c0_67] : memref<1x8x32xf32, #tpu.memory_space<vmem>>, vector<1x8x32xf32>
    %175 = vector.shape_cast %174 : vector<1x8x32xf32> to vector<8x32xf32>
    %176 = vector.shape_cast %173 : vector<8x32xf32> to vector<1x8x32xf32>
    tpu.vector_store %arg14[%c0_65, %c0_66, %c0_67], %176 {strides = array<i32>} : memref<1x8x32xf32, #tpu.memory_space<vmem>>, vector<1x8x32xf32>,
    return
  }
  func.func @transform_0(%arg0: i32) -> (i32, i32, i32) {
    %c0_i32 = arith.constant 0 : i32
    %c0_i32_0 = arith.constant 0 : i32
    %c0_i32_1 = arith.constant 0 : i32
    return %arg0, %c0_i32, %c0_i32_0 : i32, i32, i32
  }
  func.func @transform_1(%arg0: i32) -> (i32, i32) {
    %c0_i32 = arith.constant 0 : i32
    %c0_i32_0 = arith.constant 0 : i32
    %c0_i32_1 = arith.constant 0 : i32
    return %c0_i32, %c0_i32_0 : i32, i32
  }
  func.func @transform_2(%arg0: i32) -> (i32, i32) {
    %c0_i32 = arith.constant 0 : i32
    %c0_i32_0 = arith.constant 0 : i32
    %c0_i32_1 = arith.constant 0 : i32
    return %c0_i32, %c0_i32_0 : i32, i32
  }
  func.func @transform_3(%arg0: i32) -> (i32, i32) {
    %c0_i32 = arith.constant 0 : i32
    %c0_i32_0 = arith.constant 0 : i32
    %c0_i32_1 = arith.constant 0 : i32
    return %c0_i32, %c0_i32_0 : i32, i32
  }
  func.func @transform_4(%arg0: i32) -> (i32, i32) {
    %c0_i32 = arith.constant 0 : i32
    %c0_i32_0 = arith.constant 0 : i32
    %c0_i32_1 = arith.constant 0 : i32
    return %c0_i32, %c0_i32_0 : i32, i32
  }
  func.func @transform_5(%arg0: i32) -> (i32, i32) {
    %c0_i32 = arith.constant 0 : i32
    %c0_i32_0 = arith.constant 0 : i32
    %c0_i32_1 = arith.constant 0 : i32
    return %c0_i32, %c0_i32_0 : i32, i32
  }
  func.func @transform_6(%arg0: i32) -> (i32, i32) {
    %c0_i32 = arith.constant 0 : i32
    %c0_i32_0 = arith.constant 0 : i32
    %c0_i32_1 = arith.constant 0 : i32
    return %c0_i32, %c0_i32_0 : i32, i32
  }
  func.func @transform_7(%arg0: i32) -> (i32, i32) {
    %c0_i32 = arith.constant 0 : i32
    %c0_i32_0 = arith.constant 0 : i32
    %c0_i32_1 = arith.constant 0 : i32
    return %c0_i32, %c0_i32_0 : i32, i32
  }
  func.func @transform_8(%arg0: i32) -> (i32, i32) {
    %c0_i32 = arith.constant 0 : i32
    %c0_i32_0 = arith.constant 0 : i32
    %c0_i32_1 = arith.constant 0 : i32
    return %c0_i32, %c0_i32_0 : i32, i32
  }
  func.func @transform_9(%arg0: i32) -> (i32, i32) {
    %c0_i32 = arith.constant 0 : i32
    %c0_i32_0 = arith.constant 0 : i32
    %c0_i32_1 = arith.constant 0 : i32
    return %c0_i32, %c0_i32_0 : i32, i32
  }
  func.func @transform_10(%arg0: i32) -> (i32, i32) {
    %c0_i32 = arith.constant 0 : i32
    %c0_i32_0 = arith.constant 0 : i32
    %c0_i32_1 = arith.constant 0 : i32
    return %c0_i32, %c0_i32_0 : i32, i32
  }
  func.func @transform_11(%arg0: i32) -> (i32, i32) {
    %c0_i32 = arith.constant 0 : i32
    %c0_i32_0 = arith.constant 0 : i32
    %c0_i32_1 = arith.constant 0 : i32
    return %c0_i32, %c0_i32_0 : i32, i32
  }
  func.func @transform_12(%arg0: i32) -> (i32, i32) {
    %c0_i32 = arith.constant 0 : i32
    %c0_i32_0 = arith.constant 0 : i32
    %c0_i32_1 = arith.constant 0 : i32
    return %c0_i32, %c0_i32_0 : i32, i32
  }
  func.func @transform_13(%arg0: i32) -> (i32, i32, i32) {
    %c0_i32 = arith.constant 0 : i32
    %c0_i32_0 = arith.constant 0 : i32
    %c0_i32_1 = arith.constant 0 : i32
    return %arg0, %c0_i32, %c0_i32_0 : i32, i32, i32
  }
}

</mosaic_0001>

<bundles_post_ra>
// kernel: tpu_custom_call.1
= control target key start
LH: loop header
LB: loop body
LE: loop exit
PB: predicated region body
PF: predicated region fallthrough
CT: control target
= control target key end

     0   :  { %s2186_s0 = inlined_call_operand.vmem [shape: f32[2,8,32], index: 0, kind: input, shape index: {}]   ;;  %s2187_s1 = inlined_call_operand.vmem [shape: f32[1,32], index: 1, kind: input, shape index: {}]   ;;  %s2188_s2 = inlined_call_operand.vmem [shape: f32[1,32], index: 2, kind: input, shape index: {}]   ;;  %s2189_s3 = inlined_call_operand.vmem [shape: bf16[32,96], index: 3, kind: input, shape index: {}]   ;;  %s2190_s4 = inlined_call_operand.vmem [shape: f32[1,96], index: 4, kind: input, shape index: {}]   ;;  %s2191_s5 = inlined_call_operand.vmem [shape: bf16[32,32], index: 5, kind: input, shape index: {}]   ;;  %s2192_s6 = inlined_call_operand.vmem [shape: f32[1,32], index: 6, kind: input, shape index: {}]   ;;  %s2193_s7 = inlined_call_operand.vmem [shape: f32[1,32], index: 7, kind: input, shape index: {}]   ;;  %s2194_s8 = inlined_call_operand.vmem [shape: f32[1,32], index: 8, kind: input, shape index: {}]   ;;  %s2195_s9 = inlined_call_operand.vmem [shape: bf16[32,128], index: 9, kind: input, shape index: {}]   ;;  %s2196_s10 = inlined_call_operand.vmem [shape: f32[1,128], index: 10, kind: input, shape index: {}]   ;;  %s2197_s11 = inlined_call_operand.vmem [shape: bf16[128,32], index: 11, kind: input, shape index: {}]   ;;  %s2198_s12 = inlined_call_operand.vmem [shape: f32[1,32], index: 12, kind: input, shape index: {}]   ;;  %s2199_s13 = inlined_call_operand.hbm [shape: f32[2,8,32], index: 13, kind: output, shape index: {}]  }
   0x1   :  { %2200 = sst [smem:[#allocation5_spill]] %s2186_s0 }
   0x2   :  { %2201 = sst [smem:[#allocation6_spill]] %s2187_s1 }
   0x3   :  { %2202 = sst [smem:[#allocation7_spill]] %s2188_s2 }
   0x4   :  { %18 = vsyncpa [#allocation3], 0 }
   0x5   :  { %20 = vsyncpa [#allocation3 + $0x1], 0  ;;  %s1894_s25 = smov 0   ;;  %s1896_s26 = smov 0  }
   0x6   :  { %s1898_s27 = smov 0   ;;  %s1900_s28 = smov 0  }
   0x7 LB: > { %s1915_s29 = sadd.s32 4294967295, %s1808_s28   ;;  %s1469_s30 = sadd.s32 4294967294, %s1808_s28   ;;  %s1808_s28 = sphi %s1900_s28, %s2211_s28   ;;  %s1804_s27 = sphi %s1898_s27, %s2210_s27   ;;  %s1800_s26 = sphi %s1896_s26, %s2209_s26   ;;  %s1796_s25 = sphi %s1894_s25, %s2208_s25  }
   0x8   : > { %s1919_s14 = sadd.s32 1, %s1808_s28   ;;  %s311_s15 = sadd.s32 1, %s1804_s27 }
   0x9   : > { %s308_s16 = ssub.s32 %s1808_s28, %s1919_s14  ;;  %p321_p0 = scmp.ne.s32.totalorder %s1804_s27, %s1800_s26 }
   0xa   : > { %p309_p1 = scmp.eq.s32.totalorder %s308_s16, 0  ;;  %p322_p2 = scmp.eq.s32.totalorder %s1915_s29, 1 }
   0xb   : > { %p327_p3 = scmp.ne.s32.totalorder %s1800_s26, %s1796_s25  ;;  %p328_p4 = scmp.eq.s32.totalorder %s1469_s30, 1 }
   0xc   : > { %s1930_s17 = scalar_select %p309_p1, %s1804_s27, %s311_s15  }
   0xd   : > { %p1932_p5 = por %p322_p2, %p321_p0  ;;  %p1936_p6 = por %p328_p4, %p327_p3 }
   0xe   : > { %p1472_p7 = scmp.ge.s32.totalorder %s1808_s28, 1  ;;  %p389_p8 = scmp.lt.s32.totalorder %s1808_s28, 3 }
  0x10   : > { %p390_p9 = pnand %p1472_p7, %p389_p8 }
  0x11   : > { %p432_p10 = scmp.lt.s32.totalorder (!%p390_p9), %s1915_s29, 1  ;;  %vm440_vm0 = vcmask (!%p390_p9), 261120   ;;  %s2205_s0 = sld [smem:[#allocation5_spill]] (!%p390_p9)  ;;  %v1712_v7 = vld [vmem:[%s2189_s3] sm:$0xff] (!%p390_p9)   ;;  %v1810_v8 = vmov (!%p390_p9), 0.0   ;;  %vm1811_vm1 = vmmov (!%p390_p9), 0  }
  0x12   : > { %393 = sbr.rel (%p390_p9) target bundleno = 4244 (0x1094), region = 72  ;;  %1552 = vmatprep.subr.bf16.mxu1 (!%p390_p9), %v1810_v8  ;;  %1556 = vmatprep.mubr.msk.bf16.mxu1 (!%p390_p9), %vm1811_vm1, %v1810_v8  ;;  %v1713_v9 = vld [vmem:[%s2189_s3 + $0x8] sm:$0xff] (!%p390_p9)   ;;  %s2206_s1 = sld [smem:[#allocation6_spill]] (!%p390_p9)  ;;  %v1477_v20 = vld [vmem:[%s2190_s4] ss:$0 sm:$0xff] (!%p390_p9)  ;;  %vm540_vm2 = vcmask (!%p390_p9), 64512  }
  0x13   : > { %1553 = vmatpush3.bf16.msra.mxu1 (!%p390_p9), %v1712_v7  ;;  %1578 = vmatprep.subr.bf16.mxu0 (!%p390_p9), %v1810_v8  ;;  %s2207_s2 = sld [smem:[#allocation7_spill]] (!%p390_p9)  ;;  %s1812_s16 = smov (!%p390_p9), 64   ;;  %vm604_vm3 = vcmask (!%p390_p9), 1043456  }
  0x14   : > { %1554 = vmatprep.subr.bf16.mxu1 (!%p390_p9), %v1810_v8  ;;  %1580 = vmatprep.mubr.msk.bf16.mxu0 (!%p390_p9), %vm1811_vm1, %v1810_v8  ;;  %s1815_s22 = smov (!%p390_p9), 120   ;;  %s1816_s23 = smov (!%p390_p9), 56  }
  0x15   : > { %s1818_s30 = smov (!%p390_p9), 112   ;;  %s1819_s15 = smov (!%p390_p9), 48  }
  0x17   : > { %1555 = vmatpush3.bf16.msra.mxu1 (!%p390_p9), %v1713_v9 }
  0x18   : > { %1560 = vmatprep.subr.bf16.mxu1 (!%p390_p9), %v1810_v8  ;;  %v1475_v14 = vld [vmem:[%s2206_s1] ss:$0 sm:$0xff] (!%p390_p9) }
  0x19   : > { %s433_s20 = scalar_select %p432_p10, %s1915_s29, 1  ;;  %v1476_v16 = vld [vmem:[%s2207_s2] ss:$0 sm:$0xff] }
  0x1b   : > { %s1474_s21 = sshll.u32 %s433_s20, 3  ;;  %s1813_s20 = smov 96  }
  0x1c   : > { %s435_s24 = scalar_lea.vmem %s2205_s0, %s1474_s21  ;;  %s1814_s21 = smov 88  }
  0x1d   : > { %v1947_v0 = vld [vmem:[%s435_s24] sm:$0xff]  ;;  %s1817_s24 = smov 80  }
  0x1e   : > { %v441_v1 = vsel %vm440_vm0, %v1947_v0, 0.0 }
  0x1f   : > { %442 = vadd.xlane.f32.xlu0 %v441_v1  ;;  %v761_v1 = vld [vmem:[%s2191_s5 + $0x4] sm:$0xf] }
  0xac   : > { %v443_v2 = vpop.xlane.xlu0 %442 }
  0xad   : > { %v445_v3 = vmul.f32 0.03125, %v443_v2  ;;  %v766_v2 = vsel %vm604_vm3, %v761_v1, 0 }
  0xaf   : > { %v446_v4 = vsub.f32 %v1947_v0, %v445_v3 }
  0xb1   : > { %v447_v5 = vmul.f32 %v446_v4, %v446_v4 }
  0xb3   : > { %v448_v6 = vsel %vm440_vm0, %v447_v5, 0.0  ;;  %v649_v5 = vld [vmem:[%s2191_s5] sm:$0xf] }
  0xb4   : > { %449 = vadd.xlane.f32.xlu0 %v448_v6  ;;  %v812_v9 = vsel %vm604_vm3, %v649_v5, 0 }
 0x141   : > { %v450_v10 = vpop.xlane.xlu0 %449 }
 0x142   : > { %v451_v11 = vmul.f32 0.03125, %v450_v10 }
 0x144   : > { %v452_v12 = vadd.f32 1e-05, %v451_v11 }
 0x146   : > { %1724 = vrsqrt.f32 %v452_v12 }
 0x150   : > { %v1725_v13 = vpop.eup %1724 }
 0x151   : > { %v454_v15 = vmul.f32 %v1725_v13, %v446_v4 }
 0x153   : > { %v461_v17 = vmul.f32 %v1475_v14, %v454_v15 }
 0x155   : > { %v468_v18 = vadd.f32 %v1476_v16, %v461_v17 }
 0x157   : > { %v469_v19 = vpack.c.bf16 %v468_v18, %v468_v18 }
 0x159   : > { %1557 = vmatmul.mubr.msk.bf16.vlgmr.msra.gmra.mrb[0].mxu1 %vm440_vm0, %v469_v19 }
 0x15a   : > { %1562 = vmatprep.mubr.msk.bf16.mxu1 %vm1811_vm1, %v1810_v8 }
 0x22c   : > { %v530_v21 = vpop.f32.mrb[0].mxu1 }
 0x22d   : > { %v531_v22 = vadd.f32 %v1477_v20, %v530_v21  ;;  %v1558_v23 = vpop.f32.mrb[1].mxu1 }
 0x22e   : > { %v533_v24 = vpop.f32.mrb[2].mxu1 }
 0x22f   : > { %v1979_v25 = vpack.c.bf16 %v531_v22, %v531_v22  ;;  %v1559_v26 = vpop.f32.mrb[3].mxu1 }
 0x231   : > { %599 = vrot.lane.b32.xlu0 %v1979_v25, %s1812_s16  ;;  %538 = vrot.lane.b32.xlu1 %v1979_v25, %s1813_s20  ;;  %s1822_s16 = smov 40   ;;  %s1823_s20 = smov [#allocation2]  }
 0x2a3   : > { %v539_v27 = vpop.permute.xlu1 %538  ;;  %v600_v29 = vpop.permute.xlu0 %599 }
 0x2a4   : > { %v545_v28 = vsel %vm540_vm2, %v539_v27, 0  ;;  %v606_v30 = vsel %vm604_vm3, %v600_v29, 0 }
 0x2a5   : > { %1561 = vmatpush3.bf16.xpose.msra.mxu1 %v545_v28 }
 0x2a6   : > { %1566 = vmatprep.subr.bf16.mxu1 %v1810_v8 }
 0x2ac   : > { %1563 = vmatmul.mubr.msk.bf16.vlgmr.msra.gmra.mrb[4].mxu1 %vm540_vm2, %v1979_v25 }
 0x2ad   : > { %1567 = vmatpush3.bf16.msra.mxu1 %v606_v30  ;;  %1568 = vmatprep.mubr.msk.bf16.mxu1 %vm1811_vm1, %v1810_v8 }
 0x2ae   : > { %1572 = vmatprep.subr.bf16.mxu1 %v1810_v8 }
 0x37f   : > { %v581_v31 = vpop.f32.mrb[4].mxu1 }
 0x380   : > { %v1564_v32 = vpop.f32.mrb[5].mxu1  ;;  %v587_v33 = vsel %vm540_vm2, %v581_v31, -inf }
 0x381   : > { %588 = vmax.xlane.f32.xlu1 %v587_v33  ;;  %v584_v34 = vpop.f32.mrb[6].mxu1 }
 0x382   : > { %v1565_v35 = vpop.f32.mrb[7].mxu1 }
 0x40e   : > { %v589_v36 = vpop.xlane.xlu1 %588 }
 0x40f   : > { %v590_v37 = vsub.f32 %v581_v31, %v589_v36 }
 0x411   : > { %v591_v38 = vmul.f32 1.442695, %v590_v37 }
 0x413   : > { %1726 = vpow2.f32 %v591_v38 }
 0x41d   : > { %v1727_v39 = vpop.eup %1726 }
 0x41e   : > { %v593_v40 = vsel %vm540_vm2, %v1727_v39, 0.0 }
 0x41f   : > { %594 = vadd.xlane.f32.xlu0 %v593_v40 }
 0x435   : > { %652 = vrot.lane.b32.xlu0 %v1979_v25, %s1814_s21  ;;  %s1750_s21 = sshll.u32 %s1823_s20, 4  ;;  %s1751_s21 = int_to_ptr.vmem [resolvable:$false] %s1750_s21 }
 0x436   : > { %s1752_s2 = scalar_lea.vmem %s1751_s21, 256 }
 0x439   : > { %650 = vrot.lane.b32.xlu0 %v1979_v25, %s1815_s22  ;;  %s1510_s22 = sshll.u32 %s1915_s29, 7 }
 0x43a   : > { %s2143_s1 = scalar_lea.hbm %s2199_s13, %s1510_s22 }
 0x4ac   : > { %v595_v41 = vpop.xlane.xlu0 %594 }
 0x4ad   : > { %1728 = vrcp.f32 %v595_v41 }
 0x4b0   : > { %v653_v44 = vpop.permute.xlu0 %652 }
 0x4b1   : > { %v658_v46 = vsel %vm540_vm2, %v653_v44, 0 }
 0x4b4   : > { %v651_v47 = vpop.permute.xlu0 %650 }
 0x4b7   : > { %v1729_v42 = vpop.eup %1728 }
 0x4b8   : > { %v597_v43 = vmul.f32 %v1729_v42, %v1727_v39 }
 0x4ba   : > { %v598_v45 = vpack.c.bf16 %v597_v43, %v597_v43 }
 0x4bc   : > { %1569 = vmatmul.mubr.msk.bf16.vlgmr.msra.gmra.mrb[8].mxu1 %vm540_vm2, %v598_v45 }
 0x4bd   : > { %1573 = vmatpush3.bf16.xpose.msra.mxu1 %v658_v46  ;;  %1574 = vmatprep.mubr.msk.bf16.mxu1 %vm1811_vm1, %v1810_v8 }
 0x4be   : > { %1584 = vmatprep.subr.bf16.mxu1 %v1810_v8 }
 0x4c4   : > { %1575 = vmatmul.mubr.msk.bf16.vlgmr.msra.gmra.mrb[12].mxu1 %vm540_vm2, %v651_v47 }
 0x4c5   : > { %1586 = vmatprep.mubr.msk.bf16.mxu1 %vm1811_vm1, %v1810_v8  ;;  %1585 = vmatpush3.bf16.msra.mxu1 %v766_v2 }
 0x4c6   : > { %1596 = vmatprep.subr.bf16.mxu1 %v1810_v8 }
 0x58f   : > { %v642_v48 = vpop.f32.mrb[8].mxu1 }
 0x590   : > { %v1570_v49 = vpop.f32.mrb[9].mxu1  ;;  %v648_v11 = vpack.c.bf16 %v642_v48, %v642_v48  ;;  %v965_v48 = vld [vmem:[%s2191_s5 + $0x8] sm:$0xf] }
 0x591   : > { %v645_v50 = vpop.f32.mrb[10].mxu1  ;;  %v970_v49 = vsel %vm604_vm3, %v965_v48, 0 }
 0x592   : > { %v1571_v51 = vpop.f32.mrb[11].mxu1 }
 0x597   : > { %v694_v52 = vpop.f32.mrb[12].mxu1 }
 0x598   : > { %v1576_v53 = vpop.f32.mrb[13].mxu1  ;;  %v700_v54 = vsel %vm540_vm2, %v694_v52, -inf }
 0x599   : > { %701 = vmax.xlane.f32.xlu1 %v700_v54  ;;  %v697_v55 = vpop.f32.mrb[14].mxu1 }
 0x59a   : > { %v1577_v56 = vpop.f32.mrb[15].mxu1 }
 0x5aa   : > { %712 = vrot.lane.b32.xlu1 %v1979_v25, %s1816_s23  ;;  %s1820_s23 = smov 72  }
 0x5ae   : > { %856 = vrot.lane.b32.xlu1 %v1979_v25, %s1817_s24  ;;  %s1821_s24 = smov 104  }
 0x5b2   : > { %854 = vrot.lane.b32.xlu1 %v1979_v25, %s1818_s30 }
 0x626   : > { %v702_v57 = vpop.xlane.xlu1 %701 }
 0x627   : > { %v703_v58 = vsub.f32 %v694_v52, %v702_v57 }
 0x629   : > { %v704_v59 = vmul.f32 1.442695, %v703_v58 }
 0x62a   : > { %v713_v60 = vpop.permute.xlu1 %712 }
 0x62b   : > { %1730 = vpow2.f32 %v704_v59  ;;  %v718_v61 = vsel %vm604_vm3, %v713_v60, 0 }
 0x62c   : > { %1579 = vmatpush3.bf16.msra.mxu0 %v718_v61 }
 0x62d   : > { %1590 = vmatprep.subr.bf16.mxu0 %v1810_v8 }
 0x62e   : > { %v857_v13 = vpop.permute.xlu1 %856 }
 0x62f   : > { %v862_v18 = vsel %vm540_vm2, %v857_v13, 0 }
 0x632   : > { %v855_v22 = vpop.permute.xlu1 %854 }
 0x635   : > { %v1731_v62 = vpop.eup %1730 }
 0x636   : > { %v706_v63 = vsel %vm540_vm2, %v1731_v62, 0.0 }
 0x637   : > { %707 = vadd.xlane.f32.xlu0 %v706_v63 }
 0x64d   : > { %916 = vrot.lane.b32.xlu0 %v1979_v25, %s1819_s15  ;;  %s429_s15 = sand.u32 1, %s1800_s26  }
 0x64e   : > { %s1397_s29 = scalar_lea.sflag [#allocation3], %s429_s15 }
 0x6c4   : > { %v708_v3 = vpop.xlane.xlu0 %707 }
 0x6c5   : > { %1732 = vrcp.f32 %v708_v3 }
 0x6c8   : > { %v917_v10 = vpop.permute.xlu0 %916 }
 0x6c9   : > { %v922_v12 = vsel %vm604_vm3, %v917_v10, 0 }
 0x6cf   : > { %v1733_v4 = vpop.eup %1732 }
 0x6d0   : > { %v710_v6 = vmul.f32 %v1733_v4, %v1731_v62  ;;  %v1124_v4 = vld [vmem:[%s2191_s5 + $0xc] sm:$0xf] }
 0x6d2   : > { %v711_v7 = vpack.c.bf16 %v710_v6, %v710_v6 }
 0x6d4   : > { %1581 = vmatmul.mubr.msk.bf16.vlgmr.msra.gmra.mrb[0].mxu0 %vm540_vm2, %v711_v7 }
 0x6d5   : > { %1591 = vmatpush3.bf16.msra.mxu0 %v812_v9  ;;  %1592 = vmatprep.mubr.msk.bf16.mxu0 %vm1811_vm1, %v1810_v8 }
 0x6d6   : > { %1602 = vmatprep.subr.bf16.mxu0 %v1810_v8 }
 0x6dc   : > { %1593 = vmatmul.mubr.msk.bf16.vlgmr.msra.gmra.mrb[4].mxu0 %vm540_vm2, %v648_v11 }
 0x6dd   : > { %1603 = vmatpush3.bf16.msra.mxu0 %v922_v12  ;;  %1604 = vmatprep.mubr.msk.bf16.mxu0 %vm1811_vm1, %v1810_v8 }
 0x6de   : > { %1614 = vmatprep.subr.bf16.mxu0 %v1810_v8 }
 0x7a7   : > { %v754_v14 = vpop.f32.mrb[0].mxu0 }
 0x7a8   : > { %v760_v15 = vpack.c.bf16 %v754_v14, %v754_v14  ;;  %v1582_v16 = vpop.f32.mrb[1].mxu0 }
 0x7a9   : > { %v757_v17 = vpop.f32.mrb[2].mxu0 }
 0x7aa   : > { %v1583_v19 = vpop.f32.mrb[3].mxu0  ;;  %1587 = vmatmul.mubr.msk.bf16.vlgmr.msra.gmra.mrb[16].mxu1 %vm540_vm2, %v760_v15 }
 0x7ab   : > { %1597 = vmatpush3.bf16.xpose.msra.mxu1 %v862_v18  ;;  %1598 = vmatprep.mubr.msk.bf16.mxu1 %vm1811_vm1, %v1810_v8 }
 0x7ac   : > { %1608 = vmatprep.subr.bf16.mxu1 %v1810_v8 }
 0x7af   : > { %v848_v20 = vpop.f32.mrb[4].mxu0 }
 0x7b0   : > { %v1594_v21 = vpop.f32.mrb[5].mxu0 }
 0x7b1   : > { %v851_v23 = vpop.f32.mrb[6].mxu0 }
 0x7b2   : > { %v1595_v24 = vpop.f32.mrb[7].mxu0  ;;  %1599 = vmatmul.mubr.msk.bf16.vlgmr.msra.gmra.mrb[20].mxu1 %vm540_vm2, %v855_v22  ;;  %v1493_v23 = vld [vmem:[%s2192_s6] ss:$0 sm:$0xff] }
 0x7b3   : > { %1610 = vmatprep.mubr.msk.bf16.mxu1 %vm1811_vm1, %v1810_v8  ;;  %1609 = vmatpush3.bf16.msra.mxu1 %v970_v49  ;;  %v1719_v49 = vld [vmem:[%s2197_s11 + $0x18] sm:$0xff]  }
 0x7b4   : > { %1620 = vmatprep.subr.bf16.mxu1 %v1810_v8 }
 0x87d   : > { %v802_v26 = vpop.f32.mrb[16].mxu1 }
 0x87e   : > { %v2037_v27 = vadd.f32 %v848_v20, %v802_v26  ;;  %v1588_v28 = vpop.f32.mrb[17].mxu1 }
 0x87f   : > { %v805_v29 = vpop.f32.mrb[18].mxu1 }
 0x880   : > { %v1589_v30 = vpop.f32.mrb[19].mxu1 }
 0x885   : > { %v898_v31 = vpop.f32.mrb[20].mxu1 }
 0x886   : > { %v1600_v32 = vpop.f32.mrb[21].mxu1  ;;  %v904_v33 = vsel %vm540_vm2, %v898_v31, -inf }
 0x887   : > { %905 = vmax.xlane.f32.xlu1 %v904_v33  ;;  %v901_v34 = vpop.f32.mrb[22].mxu1 }
 0x888   : > { %v1601_v35 = vpop.f32.mrb[23].mxu1 }
 0x889   : > { %v1714_v35 = vld [vmem:[%s2195_s9] sm:$0xff]  }
 0x914   : > { %v906_v36 = vpop.xlane.xlu1 %905 }
 0x915   : > { %v907_v37 = vsub.f32 %v898_v31, %v906_v36  ;;  %v1716_v36 = vld [vmem:[%s2197_s11] sm:$0xff]  }
 0x917   : > { %v908_v38 = vmul.f32 1.442695, %v907_v37  ;;  %v1717_v37 = vld [vmem:[%s2197_s11 + $0x8] sm:$0xff]  }
 0x919   : > { %1734 = vpow2.f32 %v908_v38  ;;  %v1718_v38 = vld [vmem:[%s2197_s11 + $0x10] sm:$0xff]  }
 0x923   : > { %v1735_v39 = vpop.eup %1734 }
 0x924   : > { %v910_v40 = vsel %vm540_vm2, %v1735_v39, 0.0 }
 0x925   : > { %911 = vadd.xlane.f32.xlu0 %v910_v40 }
 0x93b   : > { %1015 = vrot.lane.b32.xlu0 %v1979_v25, %s1820_s23 }
 0x93f   : > { %1013 = vrot.lane.b32.xlu0 %v1979_v25, %s1821_s24 }
 0x9b2   : > { %v912_v41 = vpop.xlane.xlu0 %911 }
 0x9b3   : > { %1736 = vrcp.f32 %v912_v41 }
 0x9b6   : > { %v1016_v44 = vpop.permute.xlu0 %1015 }
 0x9b7   : > { %v1021_v46 = vsel %vm540_vm2, %v1016_v44, 0 }
 0x9ba   : > { %v1014_v47 = vpop.permute.xlu0 %1013 }
 0x9bd   : > { %v1737_v42 = vpop.eup %1736 }
 0x9be   : > { %v914_v43 = vmul.f32 %v1737_v42, %v1735_v39 }
 0x9c0   : > { %v915_v45 = vpack.c.bf16 %v914_v43, %v914_v43  ;;  %v1494_v43 = vld [vmem:[%s2193_s7] ss:$0 sm:$0xff] }
 0x9c2   : > { %1605 = vmatmul.mubr.msk.bf16.vlgmr.msra.gmra.mrb[8].mxu0 %vm540_vm2, %v915_v45  ;;  %v1495_v45 = vld [vmem:[%s2194_s8] ss:$0 sm:$0xff] }
 0x9c3   : > { %1615 = vmatpush3.bf16.xpose.msra.mxu0 %v1021_v46  ;;  %1616 = vmatprep.mubr.msk.bf16.mxu0 %vm1811_vm1, %v1810_v8 }
 0x9c4   : > { %1626 = vmatprep.subr.bf16.mxu0 %v1810_v8 }
 0x9ca   : > { %1617 = vmatmul.mubr.msk.bf16.vlgmr.msra.gmra.mrb[12].mxu0 %vm540_vm2, %v1014_v47 }
 0x9cb   : > { %1628 = vmatprep.mubr.msk.bf16.mxu0 %vm1811_vm1, %v1810_v8 }
 0xa95   : > { %v958_v50 = vpop.f32.mrb[8].mxu0 }
 0xa96   : > { %v964_v51 = vpack.c.bf16 %v958_v50, %v958_v50  ;;  %v1606_v52 = vpop.f32.mrb[9].mxu0  ;;  %v1720_v50 = vld [vmem:[%s2197_s11 + $0x20] sm:$0xff]  }
 0xa97   : > { %v961_v53 = vpop.f32.mrb[10].mxu0  ;;  %v1722_v52 = vld [vmem:[%s2197_s11 + $0x30] sm:$0xff]  }
 0xa98   : > { %v1607_v54 = vpop.f32.mrb[11].mxu0  ;;  %1611 = vmatmul.mubr.msk.bf16.vlgmr.msra.gmra.mrb[24].mxu1 %vm540_vm2, %v964_v51  ;;  %v1721_v51 = vld [vmem:[%s2197_s11 + $0x28] sm:$0xff]   ;;  %v1723_v53 = vld [vmem:[%s2197_s11 + $0x38] sm:$0xff]  }
 0xa99   : > { %1622 = vmatprep.mubr.msk.bf16.mxu1 %vm1811_vm1, %v1810_v8  ;;  %v1496_v54 = vld [vmem:[%s2196_s10] ss:$0 sm:$0xff] }
 0xa9d   : > { %v1057_v55 = vpop.f32.mrb[12].mxu0 }
 0xa9e   : > { %v1618_v56 = vpop.f32.mrb[13].mxu0  ;;  %v1063_v57 = vsel %vm540_vm2, %v1057_v55, -inf }
 0xa9f   : > { %1064 = vmax.xlane.f32.xlu1 %v1063_v57  ;;  %v1060_v58 = vpop.f32.mrb[14].mxu0 }
 0xaa0   : > { %v1619_v59 = vpop.f32.mrb[15].mxu0 }
 0xab0   : > { %1075 = vrot.lane.b32.xlu1 %v1979_v25, %s1822_s16  ;;  %v1129_v25 = vsel %vm604_vm3, %v1124_v4, 0  ;;  %s1473_s16 = sshll.u32 %s429_s15, 3 }
 0xab1   : > { %1627 = vmatpush3.bf16.msra.mxu0 %v1129_v25  ;;  %s431_s23 = scalar_lea.vmem [#allocation2], %s1473_s16 }
 0xab2   : > { %1640 = vmatprep.subr.bf16.mxu0 %v1810_v8  ;;  %s1410_s24 = sshll.u32 %s431_s23, 4  ;;  %s2145_s24 = int_to_ptr.vmem [resolvable:$true] %s1410_s24 }
 0xab3   : > { %s1746_s16 = scalar_lea.vmem %s2145_s24, 128  ;;  %p1753_p0 = scmp.lt.s32.totalorder %s2145_s24, %s1751_s21 }
 0xab4   : > { %p1747_p11 = scmp.ne.s32.totalorder %s2145_s24, %s1746_s16  ;;  %p1754_p1 = scmp.lt.s32.totalorder %s1752_s2, %s1746_s16 }
 0xab6   : > { %p1748_p12 = pnand %p1747_p11, %p1932_p5  ;;  %p1755_p2 = por %p1754_p1, %p1753_p0 }
 0xab8   : > { %p1749_p13 = pneg %p1748_p12 }
 0xaba   : > { %p1756_p3 = pnand %p1755_p2, %p1749_p13 }
 0xb2c   : > { %v1065_v60 = vpop.xlane.xlu1 %1064 }
 0xb2d   : > { %v1066_v61 = vsub.f32 %v1057_v55, %v1065_v60 }
 0xb2f   : > { %v1067_v62 = vmul.f32 1.442695, %v1066_v61 }
 0xb30   : > { %v1076_v63 = vpop.permute.xlu1 %1075 }
 0xb31   : > { %1738 = vpow2.f32 %v1067_v62  ;;  %v1081_v1 = vsel %vm604_vm3, %v1076_v63, 0 }
 0xb32   : > { %1621 = vmatpush3.bf16.msra.mxu1 %v1081_v1 }
 0xb33   : > { %1632 = vmatprep.subr.bf16.mxu1 %v1810_v8 }
 0xb3b   : > { %v1739_v2 = vpop.eup %1738 }
 0xb3c   : > { %v1069_v3 = vsel %vm540_vm2, %v1739_v2, 0.0 }
 0xb3d   : > { %1070 = vadd.xlane.f32.xlu0 %v1069_v3 }
 0xb6b   : > { %v1006_v5 = vpop.f32.mrb[24].mxu1 }
 0xb6c   : > { %v1012_v6 = vadd.f32 %v1006_v5, %v2037_v27  ;;  %v1612_v7 = vpop.f32.mrb[25].mxu1 }
 0xb6d   : > { %v1009_v9 = vpop.f32.mrb[26].mxu1 }
 0xb6e   : > { %v1613_v10 = vpop.f32.mrb[27].mxu1 }
 0xbca   : > { %v1071_v11 = vpop.xlane.xlu0 %1070 }
 0xbcb   : > { %1740 = vrcp.f32 %v1071_v11 }
 0xbd5   : > { %v1741_v12 = vpop.eup %1740 }
 0xbd6   : > { %v1073_v13 = vmul.f32 %v1741_v12, %v1739_v2  ;;  %v1500_v2 = vld [vmem:[%s2198_s12] ss:$0 sm:$0xff] }
 0xbd8   : > { %v1074_v14 = vpack.c.bf16 %v1073_v13, %v1073_v13 }
 0xbda   : > { %1623 = vmatmul.mubr.msk.bf16.vlgmr.msra.gmra.mrb[28].mxu1 %vm540_vm2, %v1074_v14 }
 0xbdb   : > { %1636 = vmatprep.mubr.msk.bf16.mxu1 %vm1811_vm1, %v1810_v8  ;;  %1633 = vmatpush3.bf16.msra.mxu1 %v1714_v35 }
 0xbdc   : > { %1634 = vmatprep.subr.bf16.mxu1 %v1810_v8 }
 0xcad   : > { %v1117_v15 = vpop.f32.mrb[28].mxu1 }
 0xcae   : > { %v1123_v16 = vpack.c.bf16 %v1117_v15, %v1117_v15  ;;  %v1624_v17 = vpop.f32.mrb[29].mxu1 }
 0xcaf   : > { %v1120_v18 = vpop.f32.mrb[30].mxu1 }
 0xcb0   : > { %v1625_v19 = vpop.f32.mrb[31].mxu1  ;;  %1629 = vmatmul.mubr.msk.bf16.vlgmr.msra.gmra.mrb[16].mxu0 %vm540_vm2, %v1123_v16 }
 0xcb1   : > { %1656 = vmatprep.mubr.msk.bf16.mxu0 %vm1811_vm1, %v1810_v8  ;;  %1641 = vmatpush3.bf16.msra.mxu0 %v1716_v36 }
 0xcb2   : > { %1642 = vmatprep.subr.bf16.mxu0 %v1810_v8 }
 0xcb5   : > { %1643 = vmatpush3.bf16.msra.mxu0 %v1717_v37 }
 0xcb6   : > { %1644 = vmatprep.subr.bf16.mxu0 %v1810_v8 }
 0xcb9   : > { %1645 = vmatpush3.bf16.msra.mxu0 %v1718_v38 }
 0xcba   : > { %1646 = vmatprep.subr.bf16.mxu0 %v1810_v8 }
 0xcbd   : > { %1647 = vmatpush3.bf16.msra.mxu0 %v1719_v49 }
 0xcbe   : > { %1648 = vmatprep.subr.bf16.mxu0 %v1810_v8 }
 0xcc1   : > { %1649 = vmatpush3.bf16.msra.mxu0 %v1720_v50 }
 0xcc2   : > { %1650 = vmatprep.subr.bf16.mxu0 %v1810_v8 }
 0xcc5   : > { %1651 = vmatpush3.bf16.msra.mxu0 %v1721_v51 }
 0xcc6   : > { %1652 = vmatprep.subr.bf16.mxu0 %v1810_v8 }
 0xcc9   : > { %1653 = vmatpush3.bf16.msra.mxu0 %v1722_v52 }
 0xcca   : > { %1654 = vmatprep.subr.bf16.mxu0 %v1810_v8 }
 0xccd   : > { %1655 = vmatpush3.bf16.msra.mxu0 %v1723_v53 }
 0xd83   : > { %v1165_v20 = vpop.f32.mrb[16].mxu0 }
 0xd84   : > { %v1171_v21 = vadd.f32 %v1165_v20, %v1012_v6  ;;  %v1630_v22 = vpop.f32.mrb[17].mxu0 }
 0xd85   : > { %v1168_v24 = vpop.f32.mrb[18].mxu0 }
 0xd86   : > { %v1172_v26 = vadd.f32 %v1171_v21, %v1947_v0  ;;  %v1631_v27 = vpop.f32.mrb[19].mxu0  ;;  %v1715_v0 = vld [vmem:[%s2195_s9 + $0x8] sm:$0xff]  }
 0xd87   : > { %1635 = vmatpush3.bf16.msra.mxu1 %v1715_v0 }
 0xd88   : > { %v2080_v28 = vadd.f32 %v1493_v23, %v1172_v26 }
 0xd8a   : > { %v1183_v29 = vsel %vm440_vm0, %v2080_v28, 0.0 }
 0xd8b   : > { %1184 = vadd.xlane.f32.xlu1 %v1183_v29 }
 0xe18   : > { %v1185_v30 = vpop.xlane.xlu1 %1184 }
 0xe19   : > { %v1186_v31 = vmul.f32 0.03125, %v1185_v30 }
 0xe1b   : > { %v1187_v32 = vsub.f32 %v2080_v28, %v1186_v31 }
 0xe1d   : > { %v1188_v33 = vmul.f32 %v1187_v32, %v1187_v32 }
 0xe1f   : > { %v1189_v34 = vsel %vm440_vm0, %v1188_v33, 0.0 }
 0xe20   : > { %1190 = vadd.xlane.f32.xlu0 %v1189_v34 }
 0xead   : > { %v1191_v39 = vpop.xlane.xlu0 %1190 }
 0xeae   : > { %v1192_v40 = vmul.f32 0.03125, %v1191_v39 }
 0xeb0   : > { %v1193_v41 = vadd.f32 1e-05, %v1192_v40 }
 0xeb2   : > { %1742 = vrsqrt.f32 %v1193_v41 }
 0xebc   : > { %v1743_v42 = vpop.eup %1742 }
 0xebd   : > { %v1195_v44 = vmul.f32 %v1743_v42, %v1187_v32 }
 0xebf   : > { %v1202_v46 = vmul.f32 %v1494_v43, %v1195_v44 }
 0xec1   : > { %v1209_v47 = vadd.f32 %v1495_v45, %v1202_v46 }
 0xec3   : > { %v1210_v48 = vpack.c.bf16 %v1209_v47, %v1209_v47 }
 0xec5   : > { %1637 = vmatmul.mubr.msk.bf16.vlgmr.msra.gmra.mrb[32].mxu1 %vm440_vm0, %v1210_v48 }
 0xf98   : > { %v1271_v55 = vpop.f32.mrb[32].mxu1 }
 0xf99   : > { %v1272_v56 = vadd.f32 %v1496_v54, %v1271_v55  ;;  %v1638_v57 = vpop.f32.mrb[33].mxu1 }
 0xf9a   : > { %v1274_v58 = vpop.f32.mrb[34].mxu1 }
 0xf9b   : > { %v1278_v59 = vmul.f32 0.70710677, %v1272_v56  ;;  %v1639_v60 = vpop.f32.mrb[35].mxu1  ;;  %v1277_v8 = vmul.f32 0.5, %v1272_v56 }
 0xf9d   : > { %1744 = verf.f32 %v1278_v59 }
 0xfa7   : > { %v1745_v61 = vpop.eup %1744 }
 0xfa8   : > { %v1280_v62 = vadd.f32 1.0, %v1745_v61 }
 0xfaa   : > { %v1281_v63 = vmul.f32 %v1280_v62, %v1277_v8 }
 0xfac   : > { %v1282_v1 = vpack.c.bf16 %v1281_v63, %v1281_v63 }
 0xfae   : > { %1657 = vmatmul.mubr.bf16.vlgmr.msra.gmra.mrb[20].mxu0 %v1282_v1 }
0x1081   : > { %v1388_v3 = vpop.f32.mrb[20].mxu0 }
0x1082   : > { %v1389_v4 = vadd.f32 %v1500_v2, %v1388_v3  ;;  %v1658_v25 = vpop.f32.mrb[21].mxu0 }
0x1083   : > { %v1391_v5 = vpop.f32.mrb[22].mxu0 }
0x1084   : > { %v1394_v6 = vadd.f32 %v1389_v4, %v2080_v28  ;;  %v1659_v7 = vpop.f32.mrb[23].mxu0 }
0x1086   : > { %1395 = vst.msk [vmem:[%s431_s23] sm:$0xff] %vm440_vm0, %v1394_v6 }
0x1087   : > { %1759 = shalt.err (!%p1756_p3)
}
0x1088   : > { %s1760_s0 = scalar_lea.hbm %s2143_s1, 128  ;;  %s1764_s23 = scalar_lea.hbm %s2199_s13, 256 }
0x1089   : > { %p1761_p4 = scmp.ne.s32.totalorder %s2143_s1, %s1760_s0  ;;  %p1765_p9 = scmp.lt.u32.totalorder %s2143_s1, %s2199_s13 }
0x108a   : > { %p1766_p10 = scmp.lt.u32.totalorder %s1764_s23, %s1760_s0  ;;  %p1768_p12 = scmp.lt.u32.totalorder %s1760_s0, %s2143_s1 }
0x108b   : > { %p1762_p7 = pnand %p1761_p4, %p1932_p5 }
0x108c   : > { %p1767_p11 = por %p1766_p10, %p1765_p9 }
0x108d   : > { %p1763_p8 = pneg %p1762_p7 }
0x108e   : > { %p1769_p13 = por %p1768_p12, %p1767_p11 }
0x1090   : > { %p1770_p0 = pnand %p1769_p13, %p1763_p8 }
0x1092   : > { %1773 = shalt.err (!%p1770_p0)
}
0x1093   : > { %1660 = dma.vmem_to_hbm [thread:$0]  (%p1932_p5), %s2145_s24, 128, %s2143_s1, %s1397_s29  }
0x1094 PF: > { %p1666_p1 = scmp.ge.s32.totalorder %s1808_s28, 2  ;;  %s1422_s2 = sand.u32 1, %s1796_s25  }
0x1095   : > { %s1423_s16 = scalar_lea.sflag [#allocation3], %s1422_s2 }
0x1096   : > { %p1663_p2 = pnand %p1666_p1, %p1936_p6 }
0x1098   : > { %1791 = dma.done.wait (!%p1663_p2), %s1423_s16, 128  }
0x1099   : > { %1793 = vsyncadd (!%p1663_p2), %s1423_s16, 4294967168  ;;  %p23_p3 = scmp.ge.s32.totalorder %s1919_s14, 4   ;;  %s2208_s25 = smov %s1800_s26 }
0x109a   : > { %s2209_s26 = smov %s1804_s27  ;;  %s2210_s27 = smov %s1930_s17 }
0x109b   : > { %s2211_s28 = smov %s1919_s14  ;;  %25 = sbr.rel (!%p23_p3) target bundleno = 7 (0x7), region = 107 }
0x10a2   :  { %1428 = vsyncpa [#allocation3], 1 }
0x10a3   :  { %1430 = vsyncpa [#allocation3 + $0x1], 1 }

</bundles_post_ra>
